<compile_context>
chip_gen: v7x
topology: tpu7x:2x2x1
jax: 0.10.0
libtpu: 0.0.40
codegen_flags: <defaults>
</compile_context>

<pallas_src>
import functools

import jax
import jax.numpy as jnp
import numpy as np
from jax.experimental import pallas as pl
from jax.experimental.pallas import tpu as pltpu


# ----------------------------------------------------------------------------
# in-kernel helpers
# ----------------------------------------------------------------------------

def _rope_tile(x, cos, sin):
    """Rotary embedding on a 2D (rows, head_dim) f32 tile."""
    hd = x.shape[-1]
    x1 = x[..., : hd // 2]
    x2 = x[..., hd // 2:]
    rot = jnp.concatenate([-x2, x1], axis=-1)       # rotate_half
    return x * cos + rot * sin


# ----------------------------------------------------------------------------
# token-embedding gather (one DMA'd row per token, ids scalar-prefetched)
# ----------------------------------------------------------------------------

def _gather_row_kernel(ids_ref, row_ref, o_ref):
    del ids_ref  # ids are only used by the index maps
    o_ref[...] = row_ref[...]


def embed_lookup(input_ids, table):
    t = input_ids.shape[0]
    vocab, h = table.shape
    out = pl.pallas_call(
        _gather_row_kernel,
        out_shape=jax.ShapeDtypeStruct((t, 1, h), table.dtype),
        grid_spec=pltpu.PrefetchScalarGridSpec(
            num_scalar_prefetch=1,
            grid=(t,),
            in_specs=[pl.BlockSpec((1, 1, h), lambda i, ids: (ids[i], 0, 0))],
            out_specs=pl.BlockSpec((1, 1, h), lambda i, ids: (i, 0, 0)),
        ),
        compiler_params=pltpu.CompilerParams(dimension_semantics=("arbitrary",)),
    )(input_ids.astype(jnp.int32), table.reshape(vocab, 1, h))
    return out.reshape(t, h)


# ----------------------------------------------------------------------------
# RMSNorm (standalone -- only used for the final norm)
# ----------------------------------------------------------------------------

def _rmsnorm_kernel(x_ref, g_ref, o_ref, *, eps):
    x = x_ref[...].astype(jnp.float32)
    var = jnp.mean(x * x, axis=-1, keepdims=True)
    o_ref[...] = (x * jax.lax.rsqrt(var + eps)
                  * g_ref[...].astype(jnp.float32)).astype(o_ref.dtype)


def rmsnorm(x, g, eps, *, tm=128):
    t, h = x.shape
    tm = min(tm, t)
    return pl.pallas_call(
        functools.partial(_rmsnorm_kernel, eps=eps),
        out_shape=jax.ShapeDtypeStruct((t, h), x.dtype),
        grid=(t // tm,),
        in_specs=[pl.BlockSpec((tm, h), lambda i: (i, 0)),
                  pl.BlockSpec((1, h), lambda i: (0, 0))],
        out_specs=pl.BlockSpec((tm, h), lambda i: (i, 0)),
        compiler_params=pltpu.CompilerParams(dimension_semantics=("parallel",)),
    )(x, g.reshape(1, h))


# ----------------------------------------------------------------------------
# RMSNorm fused into a matmul (qkv_proj, gate_up_proj)
#   K kept as a single block so the norm statistics are local to the tile.
# ----------------------------------------------------------------------------

def _rmsnorm_matmul_kernel(x_ref, g_ref, w_ref, o_ref, *, eps):
    x = x_ref[...].astype(jnp.float32)                      # (tm, K)
    var = jnp.mean(x * x, axis=-1, keepdims=True)
    xn = x * jax.lax.rsqrt(var + eps) * g_ref[...].astype(jnp.float32)
    o_ref[...] = jnp.dot(xn.astype(jnp.bfloat16), w_ref[...],
                         preferred_element_type=jnp.float32).astype(o_ref.dtype)


def rmsnorm_matmul(x, g, w, eps, *, tm=128, tn=128):
    t, k = x.shape
    _, n = w.shape
    tm, tn = min(tm, t), min(tn, n)
    return pl.pallas_call(
        functools.partial(_rmsnorm_matmul_kernel, eps=eps),
        out_shape=jax.ShapeDtypeStruct((t, n), jnp.bfloat16),
        grid=(t // tm, n // tn),
        in_specs=[pl.BlockSpec((tm, k), lambda i, j: (i, 0)),
                  pl.BlockSpec((1, k), lambda i, j: (0, 0)),
                  pl.BlockSpec((k, tn), lambda i, j: (0, j))],
        out_specs=pl.BlockSpec((tm, tn), lambda i, j: (i, j)),
        compiler_params=pltpu.CompilerParams(
            dimension_semantics=("parallel", "parallel")),
    )(x, g.reshape(1, k), w)


# ----------------------------------------------------------------------------
# K-tiled matmul + residual add (o_proj)
# ----------------------------------------------------------------------------

def _matmul_residual_kernel(x_ref, w_ref, res_ref, o_ref, acc_ref):
    @pl.when(pl.program_id(2) == 0)
    def _():
        acc_ref[...] = jnp.zeros(acc_ref.shape, acc_ref.dtype)

    acc_ref[...] += jnp.dot(x_ref[...], w_ref[...],
                            preferred_element_type=jnp.float32)

    @pl.when(pl.program_id(2) == pl.num_programs(2) - 1)
    def _():
        o_ref[...] = (acc_ref[...] + res_ref[...].astype(jnp.float32)
                      ).astype(o_ref.dtype)


def matmul_residual(x, w, res, *, tm=128, tn=128, tk=256):
    t, k = x.shape
    _, n = w.shape
    tm, tn, tk = min(tm, t), min(tn, n), min(tk, k)
    return pl.pallas_call(
        _matmul_residual_kernel,
        out_shape=jax.ShapeDtypeStruct((t, n), jnp.bfloat16),
        grid=(t // tm, n // tn, k // tk),
        in_specs=[pl.BlockSpec((tm, tk), lambda i, j, kk: (i, kk)),
                  pl.BlockSpec((tk, tn), lambda i, j, kk: (kk, j)),
                  pl.BlockSpec((tm, tn), lambda i, j, kk: (i, j))],
        out_specs=pl.BlockSpec((tm, tn), lambda i, j, kk: (i, j)),
        scratch_shapes=[pltpu.VMEM((tm, tn), jnp.float32)],
        compiler_params=pltpu.CompilerParams(
            dimension_semantics=("parallel", "parallel", "arbitrary")),
    )(x, w, res)


# ----------------------------------------------------------------------------
# SiluAndMul fused into the K-tiled down_proj matmul + residual add
# ----------------------------------------------------------------------------

def _silu_mul_matmul_residual_kernel(g_ref, u_ref, w_ref, res_ref, o_ref, acc_ref):
    @pl.when(pl.program_id(2) == 0)
    def _():
        acc_ref[...] = jnp.zeros(acc_ref.shape, acc_ref.dtype)

    g = g_ref[...].astype(jnp.float32)
    act = g * jax.nn.sigmoid(g) * u_ref[...].astype(jnp.float32)
    acc_ref[...] += jnp.dot(act.astype(jnp.bfloat16), w_ref[...],
                            preferred_element_type=jnp.float32)

    @pl.when(pl.program_id(2) == pl.num_programs(2) - 1)
    def _():
        o_ref[...] = (acc_ref[...] + res_ref[...].astype(jnp.float32)
                      ).astype(o_ref.dtype)


def silu_mul_matmul_residual(gate_up, w, res, *, tm=128, tn=128, tk=256):
    t, two_i = gate_up.shape
    inter = two_i // 2
    _, n = w.shape
    tm, tn, tk = min(tm, t), min(tn, n), min(tk, inter)
    k_blocks = inter // tk
    return pl.pallas_call(
        _silu_mul_matmul_residual_kernel,
        out_shape=jax.ShapeDtypeStruct((t, n), jnp.bfloat16),
        grid=(t // tm, n // tn, k_blocks),
        in_specs=[pl.BlockSpec((tm, tk), lambda i, j, kk: (i, kk)),
                  pl.BlockSpec((tm, tk), lambda i, j, kk: (i, kk + k_blocks)),
                  pl.BlockSpec((tk, tn), lambda i, j, kk: (kk, j)),
                  pl.BlockSpec((tm, tn), lambda i, j, kk: (i, j))],
        out_specs=pl.BlockSpec((tm, tn), lambda i, j, kk: (i, j)),
        scratch_shapes=[pltpu.VMEM((tm, tn), jnp.float32)],
        compiler_params=pltpu.CompilerParams(
            dimension_semantics=("parallel", "parallel", "arbitrary")),
    )(gate_up, gate_up, w, res)


# ----------------------------------------------------------------------------
# RoPE applied once per layer to q and k (q also pre-scaled by head_dim**-0.5)
#   q/k stay in token-major (T, nh*hd) layout; BlockSpecs slice head columns.
# ----------------------------------------------------------------------------

def _rope_kernel(q_ref, k_ref, cos_ref, sin_ref, qo_ref, ko_ref, *, scale):
    cos = cos_ref[...]
    sin = sin_ref[...]
    q = _rope_tile(q_ref[...].astype(jnp.float32), cos, sin) * scale
    k = _rope_tile(k_ref[...].astype(jnp.float32), cos, sin)
    qo_ref[...] = q.astype(qo_ref.dtype)
    ko_ref[...] = k.astype(ko_ref.dtype)


def apply_rope(q, k, cos, sin, *, nh, hd, scale, tm=128):
    t = q.shape[0]
    tm = min(tm, t)
    blk = pl.BlockSpec((tm, hd), lambda h, i: (i, h))
    blk_cs = pl.BlockSpec((tm, hd), lambda h, i: (i, 0))
    return pl.pallas_call(
        functools.partial(_rope_kernel, scale=scale),
        out_shape=(jax.ShapeDtypeStruct((t, nh * hd), jnp.bfloat16),
                   jax.ShapeDtypeStruct((t, nh * hd), jnp.bfloat16)),
        grid=(nh, t // tm),
        in_specs=[blk, blk, blk_cs, blk_cs],
        out_specs=(blk, blk),
        compiler_params=pltpu.CompilerParams(
            dimension_semantics=("parallel", "parallel")),
    )(q, k, cos, sin)


# ----------------------------------------------------------------------------
# flash-style causal attention (q already roped & scaled, k already roped)
# ----------------------------------------------------------------------------

def _flash_attn_kernel(q_ref, k_ref, v_ref, o_ref, m_sc, l_sc, acc_sc):
    qi = pl.program_id(1)
    ki = pl.program_id(2)
    tq = q_ref.shape[0]
    tkv = k_ref.shape[0]

    @pl.when(ki == 0)
    def _():
        m_sc[...] = jnp.full(m_sc.shape, -jnp.inf, dtype=m_sc.dtype)
        l_sc[...] = jnp.zeros(l_sc.shape, dtype=l_sc.dtype)
        acc_sc[...] = jnp.zeros(acc_sc.shape, dtype=acc_sc.dtype)

    q_start = qi * tq
    k_start = ki * tkv

    # skip kv blocks that are entirely in the causal future of this q tile
    @pl.when(k_start < q_start + tq)
    def _():
        s = jax.lax.dot_general(q_ref[...], k_ref[...], (((1,), (1,)), ((), ())),
                                preferred_element_type=jnp.float32)     # (tq, tkv)
        row = q_start + jax.lax.broadcasted_iota(jnp.int32, (tq, tkv), 0)
        col = k_start + jax.lax.broadcasted_iota(jnp.int32, (tq, tkv), 1)
        s = jnp.where(col <= row, s, -1e30)       # scores are f32 -> finite mask ok

        m_prev = m_sc[...]
        m_new = jnp.maximum(m_prev, jnp.max(s, axis=-1, keepdims=True))
        alpha = jnp.exp(m_prev - m_new)
        p = jnp.exp(s - m_new)
        l_sc[...] = alpha * l_sc[...] + jnp.sum(p, axis=-1, keepdims=True)
        acc_sc[...] = alpha * acc_sc[...] + jnp.dot(
            p.astype(jnp.bfloat16), v_ref[...], preferred_element_type=jnp.float32)
        m_sc[...] = m_new

    @pl.when(ki == pl.num_programs(2) - 1)
    def _():
        o_ref[...] = (acc_sc[...] * pl.reciprocal(l_sc[...], approx=True)
                      ).astype(o_ref.dtype)


def flash_attention(q, k, v, *, nh, hd, tq=64, tkv=64):
    t = q.shape[0]
    tq, tkv = min(tq, t), min(tkv, t)
    blk_q = pl.BlockSpec((tq, hd), lambda h, qi, ki: (qi, h))
    blk_kv = pl.BlockSpec((tkv, hd), lambda h, qi, ki: (ki, h))
    return pl.pallas_call(
        _flash_attn_kernel,
        out_shape=jax.ShapeDtypeStruct((t, nh * hd), jnp.bfloat16),
        grid=(nh, t // tq, t // tkv),
        in_specs=[blk_q, blk_kv, blk_kv],
        out_specs=pl.BlockSpec((tq, hd), lambda h, qi, ki: (qi, h)),
        scratch_shapes=[pltpu.VMEM((tq, 1), jnp.float32),
                        pltpu.VMEM((tq, 1), jnp.float32),
                        pltpu.VMEM((tq, hd), jnp.float32)],
        compiler_params=pltpu.CompilerParams(
            dimension_semantics=("parallel", "parallel", "arbitrary")),
    )(q, k, v)


# ----------------------------------------------------------------------------
# in-place KV-cache write (row scatter by scalar-prefetched positions, aliased output)
#   k passed here is already roped; this kernel is a pure copy.
# ----------------------------------------------------------------------------

def _kv_cache_write_kernel(pos_ref, k_ref, v_ref, kc_hbm_ref, vc_hbm_ref,
                           kc_out_ref, vc_out_ref):
    del pos_ref, kc_hbm_ref, vc_hbm_ref     # positions only used by the index maps
    kc_out_ref[...] = k_ref[...]
    vc_out_ref[...] = v_ref[...]


def kv_cache_write(positions, k, v, k_cache, v_cache):
    t, nh, hd = k.shape
    row_in = pl.BlockSpec((1, nh, hd), lambda i, pos: (i, 0, 0))
    row_out = pl.BlockSpec((1, nh, hd), lambda i, pos: (pos[i], 0, 0))
    return pl.pallas_call(
        _kv_cache_write_kernel,
        out_shape=(jax.ShapeDtypeStruct(k_cache.shape, k_cache.dtype),
                   jax.ShapeDtypeStruct(v_cache.shape, v_cache.dtype)),
        grid_spec=pltpu.PrefetchScalarGridSpec(
            num_scalar_prefetch=1,
            grid=(t,),
            in_specs=[row_in, row_in,
                      pl.BlockSpec(memory_space=pl.ANY),
                      pl.BlockSpec(memory_space=pl.ANY)],
            out_specs=(row_out, row_out),
        ),
        # alias indices count the scalar-prefetch operand:
        #   positions=0, k=1, v=2, k_cache=3, v_cache=4
        input_output_aliases={3: 0, 4: 1},
        compiler_params=pltpu.CompilerParams(dimension_semantics=("arbitrary",)),
    )(positions.astype(jnp.int32), k, v, k_cache, v_cache)


# ----------------------------------------------------------------------------
# JAX glue / model
# ----------------------------------------------------------------------------

def rope_cos_sin(positions, head_dim, base=10000.0):
    inv_freq = 1.0 / (base ** (jnp.arange(0, head_dim, 2, dtype=jnp.float32) / head_dim))
    freqs = positions.astype(jnp.float32)[:, None] * inv_freq[None, :]
    emb = jnp.concatenate([freqs, freqs], axis=-1)          # (T, head_dim)
    return jnp.cos(emb), jnp.sin(emb)


def init_params(key, cfg):
    h = cfg["hidden_size"]
    inter = cfg["intermediate_size"]
    vocab = cfg["vocab_size"]
    bf16 = jnp.bfloat16
    layers = []
    keys = jax.random.split(key, 1 + 4 * cfg["num_layers"])
    embed = (jax.random.normal(keys[0], (vocab, h), jnp.float32) * 0.02).astype(bf16)
    kidx = 1
    for _ in range(cfg["num_layers"]):
        k0, k1, k2, k3 = keys[kidx:kidx + 4]
        kidx += 4
        layers.append(dict(
            # linear weights stored pre-transposed as (in, out): y = x @ W
            qkv=(jax.random.normal(k0, (h, 3 * h), jnp.float32) * 0.02).astype(bf16),
            o_proj=(jax.random.normal(k1, (h, h), jnp.float32) * 0.02).astype(bf16),
            gate_up=(jax.random.normal(k2, (h, 2 * inter), jnp.float32) * 0.02).astype(bf16),
            down=(jax.random.normal(k3, (inter, h), jnp.float32) * 0.02).astype(bf16),
            input_ln=jnp.ones((h,), bf16),
            post_ln=jnp.ones((h,), bf16),
        ))
    return dict(embed=embed, layers=layers, final_ln=jnp.ones((h,), bf16))


def llama_forward(params, input_ids, positions, kv_caches, cfg):
    t = input_ids.shape[0]
    nh, hd = cfg["num_heads"], cfg["head_dim"]
    eps = cfg["rms_norm_eps"]
    scale = hd ** -0.5

    hidden = embed_lookup(input_ids, params["embed"])       # (T, H) bf16
    cos, sin = rope_cos_sin(positions, hd)                  # (T, hd) f32

    new_caches = []
    for i, lp in enumerate(params["layers"]):
        # ---- self attention block (RMSNorm fused into qkv_proj) ----
        residual = hidden
        qkv = rmsnorm_matmul(hidden, lp["input_ln"], lp["qkv"], eps)  # (T, 3H)
        q, k, v = jnp.split(qkv, 3, axis=-1)                          # (T, H) each

        q_r, k_r = apply_rope(q, k, cos, sin, nh=nh, hd=hd, scale=scale)

        k_cache, v_cache = kv_cache_write(
            positions, k_r.reshape(t, nh, hd), v.reshape(t, nh, hd), *kv_caches[i])
        new_caches.append((k_cache, v_cache))

        attn = flash_attention(q_r, k_r, v, nh=nh, hd=hd)
        hidden = matmul_residual(attn, lp["o_proj"], residual)

        # ---- MLP block (RMSNorm fused into gate_up, SiLU*up fused into down) ----
        residual = hidden
        gate_up = rmsnorm_matmul(hidden, lp["post_ln"], lp["gate_up"], eps)
        hidden = silu_mul_matmul_residual(gate_up, lp["down"], residual)

    hidden = rmsnorm(hidden, params["final_ln"], eps)
    return hidden, new_caches


# ----------------------------------------------------------------------------
# pure-JAX f32 reference
# ----------------------------------------------------------------------------

def _ref_rmsnorm(x, w, eps):
    var = jnp.mean(x * x, axis=-1, keepdims=True)
    return x * jax.lax.rsqrt(var + eps) * w


def _ref_rope(x, cos, sin):
    hd = x.shape[-1]
    x1, x2 = x[..., :hd // 2], x[..., hd // 2:]
    rot = jnp.concatenate([-x2, x1], axis=-1)
    return x * cos[:, None, :] + rot * sin[:, None, :]


def ref_forward(params, input_ids, positions, cfg):
    f32 = jnp.float32
    t = input_ids.shape[0]
    nh, hd = cfg["num_heads"], cfg["head_dim"]
    eps = cfg["rms_norm_eps"]
    scale = hd ** -0.5
    hidden = params["embed"].astype(f32)[input_ids]
    cos, sin = rope_cos_sin(positions, hd)
    for lp in params["layers"]:
        residual = hidden
        x = _ref_rmsnorm(hidden, lp["input_ln"].astype(f32), eps)
        qkv = x @ lp["qkv"].astype(f32)
        q, k, v = jnp.split(qkv, 3, axis=-1)
        q = _ref_rope(q.reshape(t, nh, hd), cos, sin)
        k = _ref_rope(k.reshape(t, nh, hd), cos, sin)
        v = v.reshape(t, nh, hd)
        s = jnp.einsum("tnd,snd->nts", q, k) * scale
        mask = jnp.tril(jnp.ones((t, t), bool))
        s = jnp.where(mask[None], s, -1e30)
        p = jax.nn.softmax(s, axis=-1)
        attn = jnp.einsum("nts,snd->tnd", p, v).reshape(t, nh * hd)
        hidden = residual + attn @ lp["o_proj"].astype(f32)
        residual = hidden
        x = _ref_rmsnorm(hidden, lp["post_ln"].astype(f32), eps)
        gu = x @ lp["gate_up"].astype(f32)
        inter = gu.shape[-1] // 2
        act = jax.nn.silu(gu[:, :inter]) * gu[:, inter:]
        hidden = residual + act @ lp["down"].astype(f32)
    return _ref_rmsnorm(hidden, params["final_ln"].astype(f32), eps)


# ----------------------------------------------------------------------------
# main
# ----------------------------------------------------------------------------

if __name__ == "__main__":
    cfg = dict(
        vocab_size=512,
        hidden_size=256,        # (8,128)-aligned: H = nh * hd, hd = 128
        intermediate_size=512,
        num_heads=2,
        head_dim=128,
        num_layers=2,
        rms_norm_eps=1e-6,
        max_seq=256,
    )
    assert cfg["hidden_size"] == cfg["num_heads"] * cfg["head_dim"]

    key = jax.random.PRNGKey(0)
    pkey, idkey = jax.random.split(key)
    params = init_params(pkey, cfg)

    T = 128
    input_ids = jax.random.randint(idkey, (T,), 0, cfg["vocab_size"], dtype=jnp.int32)
    positions = jnp.arange(T, dtype=jnp.int32)
    kv_caches = [
        (jnp.zeros((cfg["max_seq"], cfg["num_heads"], cfg["head_dim"]), jnp.bfloat16),
         jnp.zeros((cfg["max_seq"], cfg["num_heads"], cfg["head_dim"]), jnp.bfloat16))
        for _ in range(cfg["num_layers"])
    ]

    out, new_caches = llama_forward(params, input_ids, positions, kv_caches, cfg)
    out = jax.block_until_ready(out)

    got = np.asarray(out.astype(jnp.float32))
    ref = np.asarray(ref_forward(params, input_ids, positions, cfg))
    assert got.shape == (T, cfg["hidden_size"])
    assert np.all(np.isfinite(got))
    np.testing.assert_allclose(got, ref, rtol=5e-2, atol=5e-2)

    # aliased in-place KV write: rows outside `positions` must be untouched zeros
    k_cache0 = np.asarray(new_caches[0][0].astype(jnp.float32))
    assert np.all(k_cache0[T:] == 0.0)
    assert np.all(np.isfinite(k_cache0[:T]))

    print("KERNEL_OK")
</pallas_src>

<mosaic_0001>
module attributes {stable_mosaic.version = 11 : i64} {
  func.func @_gather_row_kernel(%arg0: i32, %arg1: memref<128xi32, #tpu.memory_space<smem>>, %arg2: memref<1x1x256xbf16, #tpu.memory_space<vmem>>, %arg3: memref<1x1x256xbf16, #tpu.memory_space<vmem>>) attributes {dimension_semantics = [#tpu.dimension_semantics<arbitrary>], iteration_bounds = array<i64: 128>, scalar_prefetch = 1 : i64, scratch_operands = 0 : i64, tpu.core_type = #tpu.core_type<tc>, window_params = [{transform_indices = @transform_0, window_bounds = array<i64: 1, 1, 256>}, {transform_indices = @transform_1, window_bounds = array<i64: 1, 1, 256>}]} {
    %c0 = arith.constant 0 : index
    %c0_0 = arith.constant 0 : index
    %c0_1 = arith.constant 0 : index
    %0 = vector.load %arg2[%c0, %c0_0, %c0_1] : memref<1x1x256xbf16, #tpu.memory_space<vmem>>, vector<1x1x256xbf16>
    %c0_2 = arith.constant 0 : index
    %c0_3 = arith.constant 0 : index
    %c0_4 = arith.constant 0 : index
    %1 = vector.load %arg3[%c0_2, %c0_3, %c0_4] : memref<1x1x256xbf16, #tpu.memory_space<vmem>>, vector<1x1x256xbf16>
    tpu.vector_store %arg3[%c0_2, %c0_3, %c0_4], %0 {strides = array<i32>} : memref<1x1x256xbf16, #tpu.memory_space<vmem>>, vector<1x1x256xbf16>,
    return
  }
  func.func @transform_0(%arg0: i32, %arg1: memref<128xi32, #tpu.memory_space<smem>>) -> (i32, i32, i32) {
    %0 = arith.index_cast %arg0 : i32 to index
    %1 = memref.load %arg1[%0] : memref<128xi32, #tpu.memory_space<smem>>
    %c0_i32 = arith.constant 0 : i32
    %c0_i32_0 = arith.constant 0 : i32
    %c0_i32_1 = arith.constant 0 : i32
    return %1, %c0_i32, %c0_i32_0 : i32, i32, i32
  }
  func.func @transform_1(%arg0: i32, %arg1: memref<128xi32, #tpu.memory_space<smem>>) -> (i32, i32, i32) {
    %c0_i32 = arith.constant 0 : i32
    %c0_i32_0 = arith.constant 0 : i32
    %c0_i32_1 = arith.constant 0 : i32
    return %arg0, %c0_i32, %c0_i32_0 : i32, i32, i32
  }
}

</mosaic_0001>

<bundles_post_ra>
// kernel: tpu_custom_call.1
= control target key start
LH: loop header
LB: loop body
LE: loop exit
PB: predicated region body
PF: predicated region fallthrough
CT: control target
= control target key end

     0   :  { %s266_s0 = inlined_call_operand.vmem [shape: s32[128], index: 0, kind: input, shape index: {}]   ;;  %s267_s1 = inlined_call_operand.vmem [shape: bf16[512,1,256], index: 1, kind: input, shape index: {}]   ;;  %s268_s2 = inlined_call_operand.vmem [shape: bf16[128,1,256], index: 2, kind: output, shape index: {}]  }
   0x1   :  { %s7_s11 = sshll.u32 %s266_s0, 4  ;;  %s8_s11 = int_to_ptr.vmem [resolvable:$true] %s7_s11 }
   0x2   :  { %s208_s12 = scalar_lea.vmem %s8_s11, 16  ;;  %p213_p1 = scmp.lt.s32.totalorder %s8_s11, %s8_s11 }
   0x3   :  { %p209_p0 = scmp.ne.s32.totalorder %s8_s11, %s208_s12  ;;  %p214_p2 = scmp.lt.s32.totalorder %s208_s12, %s208_s12 }
   0x5   :  { %p215_p3 = por %p214_p2, %p213_p1 }
   0x7   :  { %p216_p4 = pnand %p215_p3, %p209_p0 }
   0x9   :  { %219 = shalt.err (!%p216_p4)  }
   0xa   :  { %s230_s13 = smov [#allocation3]  }
   0xb   :  { %10 = dma.vmem_to_smem %s8_s11, 16, %s230_s13, [#allocation2] }
   0xc   :  { %224 = dma.done.wait [#allocation2], 16 }
   0xd   :  { %225 = vsyncadd [#allocation2], 4294967280 }
   0xe   :  { %12 = sfence }
   0xf   :  { %s249_s14 = smov 0  }
  0x10 LB: > { %s190_s0 = sadd.s32 4294967295, %s228_s14   ;;  %p194_p5 = scmp.ge.s32.totalorder %s228_s14, 1  ;;  %s228_s14 = sphi %s249_s14, %s18_s14  }
  0x11   : > { %p97_p6 = scmp.lt.s32.totalorder %s228_s14, 129 }
  0x13   : > { %p98_p7 = pnand %p194_p5, %p97_p6 }
  0x14   : > { %s116_s15 = sld [smem:[#allocation3 + %s190_s0]] (!%p98_p7)  ;;  %p122_p8 = scmp.lt.s32.totalorder (!%p98_p7), %s190_s0, 127  ;;  %vm127_vm0 = vcmask (!%p98_p7), 1040384   ;;  %vm128_vm1 = vsmask.f32 (!%p98_p7), 256  ;;  %vm130_vm2 = vcmask (!%p98_p7), 1041409  }
  0x15   : > { %101 = sbr.rel (%p98_p7) target bundleno = 35 (0x23), region = 24  ;;  %vm131_vm3 = vsmask.f32 (!%p98_p7), 1280  ;;  %vm129_vm4 = vmand (!%p98_p7), %vm127_vm0, %vm128_vm1 }
  0x16   : > { %vm132_vm5 = vmand (!%p98_p7), %vm130_vm2, %vm131_vm3 }
  0x17   : > { %vm133_vm6 = vmor (!%p98_p7), %vm132_vm5, %vm129_vm4 }
  0x1a   : > { %p117_p9 = scmp.lt.s32.totalorder (!%p98_p7), %s116_s15, 511 }
  0x1c   : > { %s270_s0 = smov (!%p122_p8, %s190_s0), 127  ;;  %s272_s15 = smov (!%p117_p9, %s116_s15), 511 }
  0x1d   : > { %s196_s16 = sshll.u32 %s270_s0, 1  ;;  %s195_s20 = sshll.u32 %s272_s15, 1 }
  0x1e   : > { %s125_s19 = scalar_lea.vmem %s268_s2, %s196_s16  ;;  %s120_s23 = scalar_lea.vmem %s267_s1, %s195_s20 }
  0x1f   : > { %v134_v0 = vld [vmem:[%s125_s19] sm:$0x3] }
  0x20   : > { %v126_v1 = vld [vmem:[%s120_s23] sm:$0x3] }
  0x21   : > { %v135_v2 = vsel %vm133_vm6, %v126_v1, %v134_v0 }
  0x22   : > { %136 = vst [vmem:[%s125_s19] sm:$0x3] %v135_v2 }
  0x23 PF: > { %s18_s14 = sadd.s32 1, %s228_s14  }
  0x24   : > { %p15_p10 = scmp.ge.s32.totalorder %s18_s14, 130  }
  0x26   :  { %17 = sbr.rel (!%p15_p10) target bundleno = 16 (0x10), region = 54 }

</bundles_post_ra>
